<compile_context>
chip_gen: v6e
topology: v6e:2x2x1
jax: 0.10.0
libtpu: 0.0.40
codegen_flags: <defaults>
</compile_context>

<pallas_src>
import functools

import jax
import jax.numpy as jnp
import numpy as np
from jax.experimental import pallas as pl
from jax.experimental.pallas import tpu as pltpu


# ---------------------------------------------------------------------------
# pltpu.roll direction probe (runs once, eagerly).
# The conv gather needs  result[:, r] = a[:, r + off]; with jnp.roll semantics that is
# shift = -off.  Pin the hardware rotate direction empirically so the 3x3 taps are
# correct on any jax / Mosaic version.
# ---------------------------------------------------------------------------
_ROLL_SIGN = None


def _roll_sign():
    global _ROLL_SIGN
    if _ROLL_SIGN is None:
        def probe(x_ref, o_ref):
            o_ref[...] = pltpu.roll(x_ref[...], 1, axis=1)

        x = jnp.broadcast_to(jnp.arange(128, dtype=jnp.float32)[None, :], (8, 128))
        y = pl.pallas_call(
            probe, out_shape=jax.ShapeDtypeStruct((8, 128), jnp.float32)
        )(x)
        # jnp.roll convention: result[0] == 127  ->  use shift = -offset
        _ROLL_SIGN = -1 if float(y[0, 0]) == 127.0 else 1
    return _ROLL_SIGN


_TAPS = tuple((oy, ox) for oy in (-1, 0, 1) for ox in (-1, 0, 1))  # (dy, dx), row-major


# ---------------------------------------------------------------------------
# Fused per-level Pallas kernel: runs every flow step of the level in VMEM.
# One grid step processes g samples laid out on the lane axis (L = g*H*W lanes).
# ---------------------------------------------------------------------------
def _level_kernel(x_ref, m_ref, bv_ref, w1_ref, b1_ref, w2_ref, b2_ref,
                  w3s_ref, w3t_ref, b3s_ref, b3t_ref, sc_ref,
                  xo_ref, sldj_ref, *, H, W, g, roll_sign):
    HW = H * W
    L = g * HW
    num_steps = m_ref.shape[0]

    x = x_ref[0]                                               # (C, L) channel-major

    # Per-lane spatial coordinates; samples occupy contiguous H*W lane spans.
    lane = jax.lax.broadcasted_iota(jnp.int32, (1, L), 1)
    xpos = lane % W
    ypos = (lane // W) % H

    masks = []                                                 # 3x3 border masks
    for oy, ox in _TAPS:
        conds = []
        if oy == -1:
            conds.append(ypos >= 1)
        elif oy == 1:
            conds.append(ypos <= H - 2)
        if ox == -1:
            conds.append(xpos >= 1)
        elif ox == 1:
            conds.append(xpos <= W - 2)
        m = None
        for cond in conds:
            m = cond if m is None else jnp.logical_and(m, cond)
        masks.append(m)

    def shifted(a, k):
        # a[:, r] -> a[:, r + oy*W + ox] inside the image, 0 outside (halo gather on XLU).
        oy, ox = _TAPS[k]
        off = oy * W + ox
        out = a if off == 0 else pltpu.roll(a, (roll_sign * off) % L, axis=1)
        return out if masks[k] is None else jnp.where(masks[k], out, 0.0)

    def conv3x3(a, w_ref, s):
        # 9 shifted tap matmuls accumulated in-register (no im2col materialisation).
        acc = None
        for k in range(9):
            term = jnp.dot(w_ref[s, k], shifted(a, k),
                           preferred_element_type=jnp.float32)
            acc = term if acc is None else acc + term
        return acc

    s_lanes = jnp.zeros((1, L), jnp.float32)
    for s in range(num_steps):
        # --- fused ActivationNormalisation + invertible 1x1 conv: one (C,C) matmul ---
        x = jnp.dot(m_ref[s], x, preferred_element_type=jnp.float32) + bv_ref[s]

        # --- coupling net NN(x_id): conv3x3 -> ReLU -> conv1x1 -> ReLU -> conv3x3 ---
        # w1 columns for the x_change rows are zero, so the full x is fed directly
        # (no in-register channel slicing).
        h = jnp.maximum(conv3x3(x, w1_ref, s) + b1_ref[s], 0.0)
        h = jnp.maximum(jnp.dot(w2_ref[s], h, preferred_element_type=jnp.float32)
                        + b2_ref[s], 0.0)
        # s / t heads: each tap's gathered operand is computed once and reused by both
        # head matmuls; outputs land in rows [0, ch) of a full-C result, rows [ch, C)
        # stay exactly zero.
        s_raw = None
        t_val = None
        for k in range(9):
            hs = shifted(h, k)
            ds = jnp.dot(w3s_ref[s, k], hs, preferred_element_type=jnp.float32)
            dt = jnp.dot(w3t_ref[s, k], hs, preferred_element_type=jnp.float32)
            s_raw = ds if s_raw is None else s_raw + ds
            t_val = dt if t_val is None else t_val + dt

        # --- affine coupling (identity on the x_id rows, where s_val = t_val = 0) ---
        s_val = sc_ref[s] * jnp.tanh(s_raw + b3s_ref[s])
        t_val = t_val + b3t_ref[s]
        x = (x + t_val) * jnp.exp(s_val)
        s_lanes = s_lanes + jnp.sum(s_val, axis=0, keepdims=True)

    xo_ref[0] = x

    # --- per-sample coupling log-det contribution (in-kernel, lane-dense output) ---
    if g == 1:
        delta = jnp.sum(s_lanes, axis=1, keepdims=True)                  # (1, 1)
    else:
        row = jax.lax.broadcasted_iota(jnp.int32, (g, L), 0)
        seg = (row == lane // HW).astype(jnp.float32)                    # (g, L)
        delta = jnp.sum(seg * s_lanes, axis=1, keepdims=True)            # (g, 1)
    sldj_ref[0] = jnp.broadcast_to(delta, (g, 128))


def _const_spec(a):
    nd = a.ndim
    return pl.BlockSpec(a.shape, lambda b: (0,) * nd)


def run_level_steps(x, sldj, lp, H, W):
    """Apply every flow step of one level.  x: (N, C, H*W) channel-major."""
    N, C, HW = x.shape

    # Group samples so each block's lane width is a multiple of 128 (unmasked stores,
    # roll on native lane widths); grid = N//g blocks -> >= 2 blocks at level 1 so both
    # v7x TensorCores are used.
    g = N
    for cand in range(1, N + 1):
        if N % cand == 0 and (cand * HW) % 128 == 0:
            g = cand
            break
    B = N // g
    L = g * HW
    if g == 1:
        xb = x
    else:
        xb = x.reshape(B, g, C, HW).transpose(0, 2, 1, 3).reshape(B, C, L)

    kernel = functools.partial(_level_kernel, H=H, W=W, g=g, roll_sign=_roll_sign())
    x_out, delta = pl.pallas_call(
        kernel,
        out_shape=(
            jax.ShapeDtypeStruct((B, C, L), jnp.float32),
            jax.ShapeDtypeStruct((B, g, 128), jnp.float32),
        ),
        grid_spec=pltpu.PrefetchScalarGridSpec(
            num_scalar_prefetch=0,
            grid=(B,),
            in_specs=[
                pl.BlockSpec((1, C, L), lambda b: (b, 0, 0)),
                _const_spec(lp["M"]),
                _const_spec(lp["bvec"]),
                _const_spec(lp["w1"]),
                _const_spec(lp["b1"]),
                _const_spec(lp["w2"]),
                _const_spec(lp["b2"]),
                _const_spec(lp["w3s"]),
                _const_spec(lp["w3t"]),
                _const_spec(lp["b3s"]),
                _const_spec(lp["b3t"]),
                _const_spec(lp["scale"]),
            ],
            out_specs=(
                pl.BlockSpec((1, C, L), lambda b: (b, 0, 0)),
                pl.BlockSpec((1, g, 128), lambda b: (b, 0, 0)),
            ),
        ),
        compiler_params=pltpu.CompilerParams(dimension_semantics=("parallel",)),
    )(xb, lp["M"], lp["bvec"], lp["w1"], lp["b1"], lp["w2"], lp["b2"],
      lp["w3s"], lp["w3t"], lp["b3s"], lp["b3t"], lp["scale"])

    if g != 1:
        x_out = x_out.reshape(B, C, g, HW).transpose(0, 2, 1, 3).reshape(N, C, HW)
    sldj = sldj + lp["ldj_const"] + delta.reshape(N, 128)[:, 0]
    return x_out, sldj


# ---------------------------------------------------------------------------
# Boundary-only XLA glue (squeeze / chunk between levels) in (N, C, H*W) layout
# ---------------------------------------------------------------------------
def squeeze_chw(x, H, W):
    N, C, _ = x.shape
    x = x.reshape(N, C, H // 2, 2, W // 2, 2)
    x = x.transpose(0, 1, 3, 5, 2, 4)                 # (N, C, 2, 2, H/2, W/2)
    return x.reshape(N, C * 4, (H // 2) * (W // 2))


def unsqueeze_chw(x, H2, W2):
    N, C4, _ = x.shape
    C = C4 // 4
    x = x.reshape(N, C, 2, 2, H2, W2)
    x = x.transpose(0, 1, 4, 2, 5, 3)                 # (N, C, H2, 2, W2, 2)
    return x.reshape(N, C, H2 * 2 * W2 * 2)


def glow_level_forward(x, sldj, lp, H, W):
    x, sldj = run_level_steps(x, sldj, lp["stacked"], H, W)
    if lp["next"] is not None:
        x = squeeze_chw(x, H, W)
        c4 = x.shape[1]
        x1, x2 = x[:, : c4 // 2], x[:, c4 // 2:]
        x1, sldj = glow_level_forward(x1, sldj, lp["next"], H // 2, W // 2)
        x = jnp.concatenate([x1, x2], axis=1)
        x = unsqueeze_chw(x, H // 2, W // 2)
    return x, sldj


def glow_forward(x_nchw, sldj, lp):
    n, c, h, w = x_nchw.shape
    r = x_nchw.reshape(n, c, h * w)          # NCHW is already channel-major: free
    r, sldj = glow_level_forward(r, sldj, lp, h, w)
    return r.reshape(n, c, h, w), sldj


# ---------------------------------------------------------------------------
# Parameter initialisation (deterministic, synthetic) + one-time prep / hoisting
# ---------------------------------------------------------------------------
def init_flow_step_params(key, num_features, hid):
    c = num_features
    ch = c // 2
    k = jax.random.split(key, 10)
    inv_w = jnp.linalg.qr(jax.random.normal(k[2], (c, c), jnp.float32))[0]
    return {
        "an_bias": 0.1 * jax.random.normal(k[0], (1, c), jnp.float32),
        "an_logs": 0.1 * jax.random.normal(k[1], (1, c), jnp.float32),
        "inv_w": inv_w,
        "w1": 0.1 * jax.random.normal(k[3], (9 * ch, hid), jnp.float32),
        "b1": 0.05 * jax.random.normal(k[4], (1, hid), jnp.float32),
        "w2": 0.1 * jax.random.normal(k[5], (hid, hid), jnp.float32),
        "b2": 0.05 * jax.random.normal(k[6], (1, hid), jnp.float32),
        "w3": 0.05 * jax.random.normal(k[7], (9 * hid, 2 * ch), jnp.float32),
        "b3": 0.05 * jax.random.normal(k[8], (1, 2 * ch), jnp.float32),
        "scale": 1.0 + 0.1 * jax.random.normal(k[9], (1, ch), jnp.float32),
    }


def init_level_params(key, num_features, hid, num_steps, num_levels):
    keys = jax.random.split(key, num_steps + 1)
    steps = [init_flow_step_params(keys[i], num_features, hid) for i in range(num_steps)]
    nxt = None
    if num_levels > 1:
        nxt = init_level_params(keys[-1], num_features * 2, hid, num_steps, num_levels - 1)
    return {"steps": steps, "next": nxt}


def prepare_flow_step_params(p):
    """Hoist ALL parameter-only math out of the traced forward (runs once)."""
    c = p["inv_w"].shape[0]
    ch = c // 2
    hid = p["w2"].shape[0]

    e = jnp.exp(p["an_logs"])                          # (1, c)
    M = p["inv_w"] * e                                 # fused ActNorm + 1x1:  x <- M x + bvec
    bvec = M @ p["an_bias"].reshape(c, 1)              # (c, 1)

    # conv3x3 #1 taps: (9, hid, C); the x_change columns are zero so the kernel can feed
    # the full activation without channel slicing.
    w1_t = p["w1"].reshape(9, ch, hid).transpose(0, 2, 1)        # (9, hid, ch)
    w1f = jnp.concatenate([jnp.zeros((9, hid, ch), jnp.float32), w1_t], axis=2)

    # conv3x3 #2 taps, interleaved s/t heads pre-split and placed in rows [0, ch) of a
    # full-C output; rows [ch, C) are exactly zero -> coupling is identity on x_id.
    w3r = p["w3"].reshape(9, hid, 2 * ch)
    w3s = w3r[:, :, 0::2].transpose(0, 2, 1)                     # (9, ch, hid)
    w3t = w3r[:, :, 1::2].transpose(0, 2, 1)
    zpad = jnp.zeros((9, ch, hid), jnp.float32)
    w3sf = jnp.concatenate([w3s, zpad], axis=1)                  # (9, C, hid)
    w3tf = jnp.concatenate([w3t, zpad], axis=1)

    zcol = jnp.zeros((ch, 1), jnp.float32)
    b3s = jnp.concatenate([p["b3"][0, 0::2].reshape(ch, 1), zcol], axis=0)   # (C, 1)
    b3t = jnp.concatenate([p["b3"][0, 1::2].reshape(ch, 1), zcol], axis=0)
    scale = jnp.concatenate([p["scale"].reshape(ch, 1), zcol], axis=0)       # (C, 1)

    # per-(H*W) log-det contribution of ActNorm + 1x1 conv (slogdet hoisted)
    ldj_unit = jnp.sum(p["an_logs"]) + jnp.linalg.slogdet(p["inv_w"])[1]
    return {
        "M": M, "bvec": bvec,
        "w1": w1f, "b1": p["b1"].reshape(hid, 1),
        "w2": p["w2"].T, "b2": p["b2"].reshape(hid, 1),
        "w3s": w3sf, "w3t": w3tf, "b3s": b3s, "b3t": b3t,
        "scale": scale, "ldj_unit": ldj_unit,
    }


def prepare_level_params(raw, H, W):
    steps = [prepare_flow_step_params(p) for p in raw["steps"]]
    stacked = {k: jnp.stack([s[k] for s in steps])
               for k in ("M", "bvec", "w1", "b1", "w2", "b2",
                         "w3s", "w3t", "b3s", "b3t", "scale")}
    stacked["ldj_const"] = (H * W) * sum(s["ldj_unit"] for s in steps)
    nxt = None
    if raw["next"] is not None:
        nxt = prepare_level_params(raw["next"], H // 2, W // 2)
    return {"stacked": stacked, "next": nxt}


# ---------------------------------------------------------------------------
# Pure-JAX reference (NCHW, lax.conv) for correctness checking
# ---------------------------------------------------------------------------
def _ref_flow_step(x, sldj, p):
    n, c, h, w = x.shape
    ch = c // 2
    hid = p["w2"].shape[0]
    hp = jax.lax.Precision.HIGHEST
    y = (x + p["an_bias"].reshape(1, c, 1, 1)) * jnp.exp(p["an_logs"]).reshape(1, c, 1, 1)
    sldj = sldj + h * w * jnp.sum(p["an_logs"])
    z = jnp.einsum("oi,nihw->nohw", p["inv_w"], y, precision=hp)
    sldj = sldj + h * w * jnp.linalg.slogdet(p["inv_w"])[1]
    x_change, x_id = z[:, :ch], z[:, ch:]
    dn = ("NCHW", "OIHW", "NCHW")
    w1c = p["w1"].T.reshape(hid, 3, 3, ch).transpose(0, 3, 1, 2)
    w3c = p["w3"].T.reshape(2 * ch, 3, 3, hid).transpose(0, 3, 1, 2)
    h1 = jax.lax.conv_general_dilated(x_id, w1c, (1, 1), ((1, 1), (1, 1)),
                                      dimension_numbers=dn, precision=hp)
    h1 = jnp.maximum(h1 + p["b1"].reshape(1, hid, 1, 1), 0.0)
    h2 = jnp.einsum("oi,nihw->nohw", p["w2"].T, h1, precision=hp)
    h2 = jnp.maximum(h2 + p["b2"].reshape(1, hid, 1, 1), 0.0)
    st = jax.lax.conv_general_dilated(h2, w3c, (1, 1), ((1, 1), (1, 1)),
                                      dimension_numbers=dn, precision=hp)
    st = st + p["b3"].reshape(1, 2 * ch, 1, 1)
    s_val = p["scale"].reshape(1, ch, 1, 1) * jnp.tanh(st[:, 0::2])
    x_change = (x_change + st[:, 1::2]) * jnp.exp(s_val)
    sldj = sldj + jnp.sum(s_val.reshape(n, -1), axis=1)
    return jnp.concatenate([x_change, x_id], axis=1), sldj


def _ref_squeeze(x):
    n, c, h, w = x.shape
    x = x.reshape(n, c, h // 2, 2, w // 2, 2).transpose(0, 1, 3, 5, 2, 4)
    return x.reshape(n, c * 4, h // 2, w // 2)


def _ref_unsqueeze(x):
    n, c4, h2, w2 = x.shape
    c = c4 // 4
    x = x.reshape(n, c, 2, 2, h2, w2).transpose(0, 1, 4, 2, 5, 3)
    return x.reshape(n, c, h2 * 2, w2 * 2)


def _ref_level(x, sldj, params):
    for p in params["steps"]:
        x, sldj = _ref_flow_step(x, sldj, p)
    if params["next"] is not None:
        x = _ref_squeeze(x)
        c4 = x.shape[1]
        x1, x2 = x[:, : c4 // 2], x[:, c4 // 2:]
        x1, sldj = _ref_level(x1, sldj, params["next"])
        x = jnp.concatenate([x1, x2], axis=1)
        x = _ref_unsqueeze(x)
    return x, sldj


# ---------------------------------------------------------------------------
if __name__ == "__main__":
    key = jax.random.PRNGKey(0)
    kx, kp = jax.random.split(key)

    N, C, H, W = 2, 4, 16, 16
    num_steps, num_levels, hid_layers = 2, 2, 16

    x = jax.random.normal(kx, (N, C, H, W), dtype=jnp.float32)
    sldj0 = jnp.zeros((N,), jnp.float32)

    raw_params = init_level_params(kp, C, hid_layers, num_steps, num_levels)
    params = prepare_level_params(raw_params, H, W)     # one-time param-only math
    _roll_sign()                                        # pin hardware rotate direction

    fwd = jax.jit(lambda xx, ss: glow_forward(xx, ss, params))
    y, sldj = fwd(x, sldj0)
    jax.block_until_ready((y, sldj))

    # pure-JAX reference for correctness
    y_r, sldj_r = jax.jit(lambda xx, ss: _ref_level(xx, ss, raw_params))(x, sldj0)
    jax.block_until_ready((y_r, sldj_r))

    assert y.shape == x.shape, (y.shape, x.shape)
    assert sldj.shape == (N,)
    assert bool(jnp.all(jnp.isfinite(y))) and bool(jnp.all(jnp.isfinite(sldj)))
    np.testing.assert_allclose(np.asarray(y), np.asarray(y_r), rtol=5e-2, atol=5e-2)
    np.testing.assert_allclose(np.asarray(sldj), np.asarray(sldj_r), rtol=5e-2, atol=5e-1)
    print("KERNEL_OK")
</pallas_src>

<mosaic_0001>
module attributes {stable_mosaic.version = 11 : i64} {
  func.func @probe(%arg0: memref<8x128xf32, #tpu.memory_space<vmem>>, %arg1: memref<8x128xf32, #tpu.memory_space<vmem>>) attributes {dimension_semantics = [], scalar_prefetch = 0 : i64, scratch_operands = 0 : i64, tpu.core_type = #tpu.core_type<tc>} {
    %c0 = arith.constant 0 : index
    %c0_0 = arith.constant 0 : index
    %0 = vector.load %arg0[%c0, %c0_0] : memref<8x128xf32, #tpu.memory_space<vmem>>, vector<8x128xf32>
    %c1_i32 = arith.constant 1 : i32
    %1 = tpu.dynamic_rotate %0 by %c1_i32 dim 1 : vector<8x128xf32>, i32 -> vector<8x128xf32>
    %c0_1 = arith.constant 0 : index
    %c0_2 = arith.constant 0 : index
    %2 = vector.load %arg1[%c0_1, %c0_2] : memref<8x128xf32, #tpu.memory_space<vmem>>, vector<8x128xf32>
    tpu.vector_store %arg1[%c0_1, %c0_2], %1 {strides = array<i32>} : memref<8x128xf32, #tpu.memory_space<vmem>>, vector<8x128xf32>,
    return
  }
}

</mosaic_0001>

<bundles_post_ra>
// kernel: tpu_custom_call.1
= control target key start
LH: loop header
LB: loop body
LE: loop exit
PB: predicated region body
PF: predicated region fallthrough
CT: control target
= control target key end

     0   :  { %6 = vsyncpa [#allocation3], 0  ;;  %s106_s0 = inlined_call_operand.hbm [shape: f32[8,128], index: 0, kind: input, shape index: {}]   ;;  %s107_s1 = inlined_call_operand.hbm [shape: f32[8,128], index: 1, kind: output, shape index: {}]  }
   0x1   :  { %7 = vsyncpa [#allocation4], 0  ;;  %s87_s6 = smov [#allocation2]  }
   0x2   :  { %s14_s7 = sshll.u32 %s87_s6, 4  ;;  %s15_s7 = int_to_ptr.vmem [resolvable:$true] %s14_s7 }
   0x3   :  { %s51_s8 = scalar_lea.vmem %s15_s7, 128  ;;  %p56_p1 = scmp.lt.s32.totalorder %s15_s7, %s15_s7 }
   0x4   :  { %p52_p0 = scmp.ne.s32.totalorder %s15_s7, %s51_s8  ;;  %p57_p2 = scmp.lt.s32.totalorder %s51_s8, %s51_s8 }
   0x6   :  { %p58_p3 = por %p57_p2, %p56_p1 }
   0x8   :  { %p59_p4 = pnand %p58_p3, %p52_p0 }
   0xa   :  { %62 = shalt.err (!%p59_p4)
}
   0xb   :  { %17 = dma.hbm_to_vmem [thread:$0]  %s106_s0, 128, %s15_s7, [#allocation3]  }
   0xc   :  { %83 = dma.done.wait [#allocation3], 128  }
   0xd   :  { %84 = vsyncadd [#allocation3], 4294967168  ;;  %v21_v0 = vld [vmem:[#allocation2] sm:$0xff]  ;;  %s88_s11 = smov 1   ;;  %s89_s12 = smov [#allocation5]  }
   0xe   :  { %22 = vrot.lane.b32.xlu0 %v21_v0, %s88_s11  ;;  %s31_s13 = sshll.u32 %s89_s12, 4  ;;  %s32_s13 = int_to_ptr.vmem [resolvable:$true] %s31_s13 }
   0xf   :  { %s63_s14 = scalar_lea.vmem %s32_s13, 128  ;;  %p68_p6 = scmp.lt.s32.totalorder %s32_s13, %s32_s13 }
  0x10   :  { %p64_p5 = scmp.ne.s32.totalorder %s32_s13, %s63_s14  ;;  %p69_p7 = scmp.lt.s32.totalorder %s63_s14, %s63_s14 }
  0x12   :  { %p70_p8 = por %p69_p7, %p68_p6 }
  0x14   :  { %p71_p9 = pnand %p70_p8, %p64_p5 }
  0x80   :  { %v23_v1 = vpop.permute.xlu0 %22 }
  0x81   :  { %24 = vst [vmem:[#allocation5] sm:$0xff] %v23_v1 }
  0x82   :  { %74 = shalt.err (!%p71_p9)
}
  0x83   :  { %34 = dma.vmem_to_hbm [thread:$0]  %s32_s13, 128, %s107_s1, [#allocation4]  }
  0x84   :  { %85 = dma.done.wait [#allocation4], 128  }
  0x85   :  { %86 = vsyncadd [#allocation4], 4294967168 }
  0x86   :  { %38 = vsyncpa [#allocation3], 1 }
  0x87   :  { %39 = vsyncpa [#allocation4], 1 }

</bundles_post_ra>
